<compile_context>
chip_gen: v6e
topology: v6e:2x2x1
jax: 0.10.0
libtpu: 0.0.40
codegen_flags: <defaults>
</compile_context>

<pallas_src>
import functools
import math

import jax
import jax.numpy as jnp
from jax import lax
from jax.experimental import pallas as pl
from jax.experimental.pallas import tpu as pltpu

_MIB = 1024 * 1024


def _margin_loss_kernel(x_ref, out_ref, acc_ref, *, margin, inv_n, tb, d,
                        nb_per, n_half):
    """x_ref: (TB, 2*D) lane-dense tile. out_ref: (1, 8, D) per-core partial.
    acc_ref: (8, D) f32 VMEM vector accumulator."""
    c = pl.program_id(0)          # core-split index ("parallel", v7x only)
    i = pl.program_id(1)          # batch-tile index ("arbitrary" reduction)

    @pl.when(i == 0)
    def _init():
        acc_ref[...] = jnp.zeros_like(acc_ref)

    x = x_ref[...]                                  # (tb, 2d), input dtype
    pos = x[:, :d].astype(jnp.float32)              # (tb, d)
    neg = x[:, d:].astype(jnp.float32)              # (tb, d)
    # TODO(synk): on v6e/v7x keep bf16 inputs in bf16 for the elementwise part
    # and only accumulate in f32 (minor VALU/vreg saving; kernel is mem-bound).
    hinge = jnp.maximum(neg - pos + margin, 0.0)    # (tb, d) f32

    # Zero rows past the logical end (partial last tile, and the clamped
    # duplicate tile on the second core when the tile count is odd).
    blk = c * nb_per + i
    row_ids = blk * tb + lax.broadcasted_iota(jnp.int32, (tb, 1), 0)
    hinge = jnp.where(row_ids < n_half, hinge, 0.0)

    # Row-group accumulation: tb % 8 == 0 keeps the reshape (8,128)-tile
    # aligned, so the axis-0 sum lowers to plain VALU vreg adds (no XLU).
    acc_ref[...] += jnp.sum(hinge.reshape(tb // 8, 8, d), axis=0)

    @pl.when(i == pl.num_programs(1) - 1)
    def _finalize():
        out_ref[0] = acc_ref[...] * inv_n


def _tile_plan(x_dtype, d, n_half):
    """Per-generation (ncores, tb, vmem_limit_bytes)."""
    try:
        kind = jax.devices()[0].device_kind.lower()
    except Exception:
        kind = ""
    if "v7" in kind:
        # 3.2 TB/s HBM: bigger blocks amortize the ~0.35us per-step overhead;
        # 64 MiB physical VMEM -> keep double-buffered input + temps well
        # under the limit.
        budget, vmem_limit, ncores = 8 * _MIB, 48 * _MIB, 2
    elif "v6" in kind:
        budget, vmem_limit, ncores = 8 * _MIB, 64 * _MIB, 1
    else:
        # v5e and conservative default: ~0.8 TB/s HBM saturates at ~4 MiB
        # blocks; raise the 16 MiB scoped-VMEM default explicitly.
        budget, vmem_limit, ncores = 4 * _MIB, 32 * _MIB, 1

    itemsize = jnp.dtype(x_dtype).itemsize
    # Sublane alignment so the block's second-minor dim fills native tiles:
    # 8 rows for 4-byte, 16 for 2-byte, 32 for 1-byte dtypes.
    sub = max(8, 32 // itemsize)
    bytes_per_row = 2 * d * itemsize
    tb = min(n_half, max(1, budget // bytes_per_row))
    tb = max(sub, (tb // sub) * sub)
    # TODO(synk): tile the D axis (extra grid dim) when one (sub, 2*D) row
    # block alone exceeds the budget (huge-D degenerate case).
    return ncores, tb, vmem_limit, sub


def margin_loss(x, margin):
    """mean(max(0, margin + x[1::2] - x[0::2])) — returns an f32 scalar."""
    B = x.shape[0]
    assert B % 2 == 0, "leading dim must be even (pos/neg interleaved rows)"
    n_half = B // 2
    d = int(math.prod(x.shape[1:]))

    # Free, contiguous reshape: row pair i -> [pos_i | neg_i] on one lane-dense
    # row, so the kernel sees 2-D (8,128)-friendly blocks and HBM is read once.
    x2 = x.reshape(n_half, 2 * d)

    ncores, tb, vmem_limit, sub = _tile_plan(x.dtype, d, n_half)
    nb_total = pl.cdiv(n_half, tb)
    if ncores > 1 and nb_total < 2:
        ncores = 1
    if ncores > 1 and nb_total % ncores != 0:
        # Best effort: shrink tb so the tile count splits evenly across cores
        # (avoids a redundant clamped-duplicate DMA on the last core).
        tb_alt = max(sub, pl.cdiv(pl.cdiv(n_half, nb_total + 1), sub) * sub)
        if pl.cdiv(n_half, tb_alt) % ncores == 0:
            tb = tb_alt
            nb_total = pl.cdiv(n_half, tb)
    nb_per = pl.cdiv(nb_total, ncores)

    itemsize = jnp.dtype(x.dtype).itemsize
    kernel = functools.partial(
        _margin_loss_kernel,
        margin=float(margin),
        inv_n=1.0 / float(n_half * d),
        tb=tb, d=d, nb_per=nb_per, n_half=n_half)

    partials = pl.pallas_call(
        kernel,
        out_shape=jax.ShapeDtypeStruct((ncores, 8, d), jnp.float32),
        grid=(ncores, nb_per),
        in_specs=[
            pl.BlockSpec(
                (tb, 2 * d),
                lambda c, i: (jnp.minimum(c * nb_per + i, nb_total - 1), 0)),
        ],
        out_specs=pl.BlockSpec((1, 8, d), lambda c, i: (c, 0, 0)),
        scratch_shapes=[pltpu.VMEM((8, d), jnp.float32)],
        compiler_params=pltpu.CompilerParams(
            dimension_semantics=("parallel", "arbitrary"),
            vmem_limit_bytes=vmem_limit),
        cost_estimate=pl.CostEstimate(
            flops=3 * n_half * d,
            transcendentals=0,
            bytes_accessed=n_half * 2 * d * itemsize + ncores * 8 * d * 4),
    )(x2)

    # Tiny epilogue: sum the per-core (8, d) partials (already scaled by 1/N).
    return jnp.sum(partials)


def _margin_loss_ref(x, margin):
    pos = x[0::2]
    neg = x[1::2]
    return jnp.mean(jnp.maximum(0.0, margin + neg - pos))


if __name__ == "__main__":
    key = jax.random.PRNGKey(0)
    B, D = 24, 128        # small; B even so pos/neg rows interleave
    margin = 0.5

    x = jax.random.normal(key, (B, D), dtype=jnp.float32)

    out = jax.block_until_ready(margin_loss(x, margin))
    ref = _margin_loss_ref(x, margin)
    assert jnp.allclose(out, ref, rtol=1e-5, atol=1e-6), (out, ref)

    print("KERNEL_OK")
</pallas_src>

<mosaic_0001>
module attributes {stable_mosaic.version = 11 : i64} {
  func.func @_margin_loss_kernel(%arg0: i32, %arg1: i32, %arg2: memref<8x256xf32, #tpu.memory_space<vmem>>, %arg3: memref<1x8x128xf32, #tpu.memory_space<vmem>>, %arg4: memref<8x128xf32, #tpu.memory_space<vmem>>) attributes {dimension_semantics = [#tpu.dimension_semantics<parallel>, #tpu.dimension_semantics<arbitrary>], iteration_bounds = array<i64: 1, 2>, scalar_prefetch = 0 : i64, scratch_operands = 1 : i64, tpu.core_type = #tpu.core_type<tc>, window_params = [{transform_indices = @transform_0, window_bounds = array<i64: 8, 256>}, {transform_indices = @transform_1, window_bounds = array<i64: 1, 8, 128>}]} {
    %c0_i32 = arith.constant 0 : i32
    %0 = arith.cmpi eq, %arg1, %c0_i32 : i32
    %1 = arith.extui %0 : i1 to i32
    %c0_i32_0 = arith.constant 0 : i32
    %2 = arith.cmpi ne, %1, %c0_i32_0 : i32
    scf.if %2 {
      %cst_10 = arith.constant 0.000000e+00 : f32
      %31 = vector.broadcast %cst_10 : f32 to vector<8x128xf32>
      %c0_11 = arith.constant 0 : index
      %c0_12 = arith.constant 0 : index
      %32 = vector.load %arg4[%c0_11, %c0_12] : memref<8x128xf32, #tpu.memory_space<vmem>>, vector<8x128xf32>
      tpu.vector_store %arg4[%c0_11, %c0_12], %31 {strides = array<i32>} : memref<8x128xf32, #tpu.memory_space<vmem>>, vector<8x128xf32>,
    } else {
    }
    %c0 = arith.constant 0 : index
    %c0_1 = arith.constant 0 : index
    %3 = vector.load %arg2[%c0, %c0_1] : memref<8x256xf32, #tpu.memory_space<vmem>>, vector<8x256xf32>
    %4 = vector.extract_strided_slice %3 {offsets = [0, 0], sizes = [8, 128], strides = [1, 1]} : vector<8x256xf32> to vector<8x128xf32>
    %5 = vector.extract_strided_slice %3 {offsets = [0, 128], sizes = [8, 128], strides = [1, 1]} : vector<8x256xf32> to vector<8x128xf32>
    %6 = arith.subf %5, %4 : vector<8x128xf32>
    %cst = arith.constant 5.000000e-01 : f32
    %7 = vector.broadcast %cst : f32 to vector<8x128xf32>
    %8 = arith.addf %6, %7 : vector<8x128xf32>
    %cst_2 = arith.constant 0.000000e+00 : f32
    %9 = vector.broadcast %cst_2 : f32 to vector<8x128xf32>
    %10 = arith.maximumf %8, %9 : vector<8x128xf32>
    %c2_i32 = arith.constant 2 : i32
    %11 = arith.muli %arg0, %c2_i32 : i32
    %12 = arith.addi %11, %arg1 : i32
    %c8_i32 = arith.constant 8 : i32
    %13 = arith.muli %12, %c8_i32 : i32
    %14 = tpu.iota {dimensions = array<i32: 0>} : vector<8x1xi32>
    %15 = vector.broadcast %13 : i32 to vector<8x1xi32>
    %16 = arith.addi %15, %14 : vector<8x1xi32>
    %c12_i32 = arith.constant 12 : i32
    %17 = vector.broadcast %c12_i32 : i32 to vector<8x1xi32>
    %18 = arith.cmpi slt, %16, %17 : vector<8x1xi32>
    %cst_3 = arith.constant 0.000000e+00 : f32
    %19 = vector.shape_cast %18 : vector<8x1xi1> to vector<8x1xi1>
    %20 = vector.broadcast %19 : vector<8x1xi1> to vector<8x128xi1>
    %21 = vector.broadcast %cst_3 : f32 to vector<8x128xf32>
    %22 = arith.select %20, %10, %21 : vector<8x128xi1>, vector<8x128xf32>
    %c0_4 = arith.constant 0 : index
    %c0_5 = arith.constant 0 : index
    %23 = vector.load %arg4[%c0_4, %c0_5] : memref<8x128xf32, #tpu.memory_space<vmem>>, vector<8x128xf32>
    %24 = vector.shape_cast %22 : vector<8x128xf32> to vector<1x8x128xf32>
    %cst_6 = arith.constant dense<0.000000e+00> : vector<8x128xf32>
    %25 = vector.multi_reduction <add>, %24, %cst_6 [0] : vector<1x8x128xf32> to vector<8x128xf32>
    %26 = arith.addf %23, %25 : vector<8x128xf32>
    %c0_7 = arith.constant 0 : index
    %c0_8 = arith.constant 0 : index
    %27 = vector.load %arg4[%c0_7, %c0_8] : memref<8x128xf32, #tpu.memory_space<vmem>>, vector<8x128xf32>
    tpu.vector_store %arg4[%c0_7, %c0_8], %26 {strides = array<i32>} : memref<8x128xf32, #tpu.memory_space<vmem>>, vector<8x128xf32>,
    %c1_i32 = arith.constant 1 : i32
    %28 = arith.cmpi eq, %arg1, %c1_i32 : i32
    %29 = arith.extui %28 : i1 to i32
    %c0_i32_9 = arith.constant 0 : i32
    %30 = arith.cmpi ne, %29, %c0_i32_9 : i32
    scf.if %30 {
      %c0_10 = arith.constant 0 : index
      %c0_11 = arith.constant 0 : index
      %31 = vector.load %arg4[%c0_10, %c0_11] : memref<8x128xf32, #tpu.memory_space<vmem>>, vector<8x128xf32>
      %cst_12 = arith.constant 6.51041686E-4 : f32
      %32 = vector.broadcast %cst_12 : f32 to vector<8x128xf32>
      %33 = arith.mulf %31, %32 : vector<8x128xf32>
      %c0_13 = arith.constant 0 : index
      %c0_14 = arith.constant 0 : index
      %c0_15 = arith.constant 0 : index
      %34 = vector.load %arg3[%c0_13, %c0_14, %c0_15] : memref<1x8x128xf32, #tpu.memory_space<vmem>>, vector<1x8x128xf32>
      %35 = vector.shape_cast %34 : vector<1x8x128xf32> to vector<8x128xf32>
      %36 = vector.shape_cast %33 : vector<8x128xf32> to vector<1x8x128xf32>
      tpu.vector_store %arg3[%c0_13, %c0_14, %c0_15], %36 {strides = array<i32>} : memref<1x8x128xf32, #tpu.memory_space<vmem>>, vector<1x8x128xf32>,
    } else {
    }
    return
  }
  func.func @transform_0(%arg0: i32, %arg1: i32) -> (i32, i32) {
    %c2_i32 = arith.constant 2 : i32
    %0 = arith.muli %arg0, %c2_i32 : i32
    %1 = arith.addi %0, %arg1 : i32
    %c1_i32 = arith.constant 1 : i32
    %2 = arith.minsi %1, %c1_i32 : i32
    %c0_i32 = arith.constant 0 : i32
    %c0_i32_0 = arith.constant 0 : i32
    return %2, %c0_i32 : i32, i32
  }
  func.func @transform_1(%arg0: i32, %arg1: i32) -> (i32, i32, i32) {
    %c0_i32 = arith.constant 0 : i32
    %c0_i32_0 = arith.constant 0 : i32
    %c0_i32_1 = arith.constant 0 : i32
    return %arg0, %c0_i32, %c0_i32_0 : i32, i32, i32
  }
}

</mosaic_0001>

<bundles_post_ra>
// kernel: tpu_custom_call.1
= control target key start
LH: loop header
LB: loop body
LE: loop exit
PB: predicated region body
PF: predicated region fallthrough
CT: control target
= control target key end

     0   :  { %6 = vsyncpa [#allocation4], 0  ;;  %s568_s0 = inlined_call_operand.hbm [shape: f32[12,256], index: 0, kind: input, shape index: {}]   ;;  %s569_s1 = inlined_call_operand.hbm [shape: f32[1,8,128], index: 1, kind: output, shape index: {}]  }
   0x1   :  { %8 = vsyncpa [#allocation4 + $0x1], 0 }
   0x2   :  { %9 = vsyncpa [#allocation5], 0  ;;  %s456_s6 = smov 0   ;;  %s458_s7 = smov 0  }
   0x3   :  { %s460_s8 = smov 0   ;;  %s462_s9 = smov 0  }
   0x4   :  { %s464_s10 = smov 0   ;;  %s466_s11 = smov 0  }
   0x5 LB: > { %s256_s12 = sadd.s32 4294967295, %s441_s11   ;;  %s24_s13 = sadd.s32 1, %s437_s10  ;;  %s441_s11 = sphi %s466_s11, %s15_s11   ;;  %s437_s10 = sphi %s464_s10, %s577_s10   ;;  %s433_s9 = sphi %s462_s9, %s576_s9   ;;  %s429_s8 = sphi %s460_s8, %s575_s8   ;;  %s425_s7 = sphi %s458_s7, %s574_s7   ;;  %s421_s6 = sphi %s456_s6, %s573_s6  }
   0x6   : > { %p25_p0 = scmp.ge.s32.totalorder %s24_s13, 2  ;;  %p33_p1 = scmp.lt.s32.totalorder %s437_s10, 1 }
   0x7   : > { %s42_s14 = sadd.s32 1, %s429_s8  ;;  %p49_p2 = scmp.ne.s32.totalorder %s429_s8, %s425_s7 }
   0x8   : > { %s579_s13 = smov (%p25_p0, %s24_s13), 0  ;;  %p50_p4 = scmp.eq.s32.totalorder %s441_s11, 0 }
   0x9   : > { %s34_s15 = scalar_select %p33_p1, %s437_s10, 1 }
   0xa   : > { %p37_p3 = scmp.lt.s32.totalorder %s579_s13, 1  ;;  %p55_p5 = scmp.ne.s32.totalorder %s425_s7, %s421_s6 }
   0xb   : > { %p56_p6 = scmp.eq.s32.totalorder %s256_s12, 0  ;;  %p51_p7 = por %p50_p4, %p49_p2 }
   0xc   : > { %s38_s16 = scalar_select %p37_p3, %s579_s13, 1 }
   0xd   : > { %p499_p8 = por %p56_p6, %p55_p5  ;;  %p282_p10 = scmp.lt.s32.totalorder %s441_s11, 2 }
   0xe   : > { %s39_s18 = ssub.s32 %s34_s15, %s38_s16  ;;  %s105_s19 = sand.u32 1, %s429_s8  }
   0xf   : > { %p40_p9 = scmp.eq.s32.totalorder %s39_s18, 0  ;;  %s271_s20 = sshll.u32 %s34_s15, 8 }
  0x10   : > { %s259_s22 = sshll.u32 %s105_s19, 4  ;;  %s119_s25 = scalar_lea.hbm %s568_s0, %s271_s20 }
  0x11   : > { %s506_s21 = scalar_select %p40_p9, %s429_s8, %s42_s14  }
  0x12   : > { %s109_s26 = scalar_lea.vmem [#allocation3], %s259_s22  ;;  %p511_p11 = pnand %p282_p10, %p51_p7 }
  0x13   : > { %s121_s27 = sshll.u32 %s109_s26, 4  ;;  %p262_p12 = scmp.ge.s32.totalorder %s441_s11, 1  ;;  %s122_s27 = int_to_ptr.vmem [resolvable:$true] %s121_s27 }
  0x14   : > { %p126_p13 = scmp.lt.s32.totalorder %s441_s11, 3  ;;  %s106_s29 = scalar_lea.sflag [#allocation4], %s105_s19 }
  0x15   : > { %p337_p0 = pneg %p511_p11  ;;  %s348_s30 = scalar_lea.vmem %s122_s27, 256 }
  0x16   : > { %p349_p1 = scmp.ne.s32.totalorder %s122_s27, %s348_s30  ;;  %s443_s2 = smov [#allocation3]  }
  0x17   : > { %s353_s3 = sshll.u32 %s443_s2, 4  ;;  %s354_s3 = int_to_ptr.vmem [resolvable:$false] %s353_s3 }
  0x18   : > { %p351_p2 = pnand %p349_p1, %p337_p0  ;;  %s355_s4 = scalar_lea.vmem %s354_s3, 512 }
  0x19   : > { %p356_p4 = scmp.lt.s32.totalorder %s122_s27, %s354_s3  ;;  %p357_p5 = scmp.lt.s32.totalorder %s355_s4, %s348_s30 }
  0x1a   : > { %p352_p3 = pneg %p351_p2 }
  0x1b   : > { %p358_p6 = por %p357_p5, %p356_p4 }
  0x1d   : > { %p359_p7 = pnand %p358_p6, %p352_p3 }
  0x1f   : > { %362 = shalt.err (!%p359_p7)
}
  0x20   : > { %281 = dma.hbm_to_vmem [thread:$0]  (!%p511_p11), %s119_s25, 256, %s122_s27, %s106_s29  }
  0x21   : > { %p127_p9 = pnand %p262_p12, %p126_p13 }
  0x22   : > { %s132_s5 = sand.u32 (!%p127_p9), 1, %s425_s7  }
  0x23   : > { %130 = sbr.rel (%p127_p9) target bundleno = 86 (0x56), region = 24  ;;  %s263_s6 = sshll.u32 (!%p127_p9), %s132_s5, 4 }
  0x24   : > { %s133_s14 = scalar_lea.sflag (!%p127_p9), [#allocation4], %s132_s5  ;;  %s136_s15 = scalar_lea.vmem (!%p127_p9), [#allocation3], %s263_s6 }
  0x28   : > { %412 = dma.done.wait (%p499_p8), %s133_s14, 256  }
  0x29   : > { %414 = vsyncadd (%p499_p8), %s133_s14, 4294967040  ;;  %p264_p10 = scmp.ne.s32.totalorder %s433_s9, 0 }
  0x2b   : > { %157 = sbr.rel (%p264_p10) target bundleno = 50 (0x32), region = 32 }
  0x30   : > { %v444_v0 = vmov 0.0  }
  0x31   : > { %158 = vst [vmem:[#allocation2] sm:$0xff] %v444_v0 }
  0x32 PF: > { %v159_v1 = vld [vmem:[%s136_s15] sm:$0xff]  ;;  %v160_v2 = vld [vmem:[%s136_s15 + $0x8] sm:$0xff]  ;;  %s265_s16 = sshll.u32 %s433_s9, 3  ;;  %v167_v3 = vlaneseq  ;;  %p266_p8 = scmp.ne.s32.totalorder %s433_s9, 1 }
  0x33   : > { %v161_v4 = vsub.f32 %v160_v2, %v159_v1  ;;  %v169_v5 = vstv %s265_s16 }
  0x34   : > { %v168_v6 = vshrl.u32 %v167_v3, 7 }
  0x35   : > { %v162_v7 = vadd.f32 0.5, %v161_v4 }
  0x36   : > { %v170_v8 = vadd.s32 %v169_v5, %v168_v6 }
  0x37   : > { %v163_v9 = vmax.f32 %v162_v7, 0.0 }
  0x38   : > { %v175_v10 = vld [vmem:[#allocation2] sm:$0xff]  ;;  %vm171_vm0 = vcmp.lt.s32.totalorder %v170_v8, 12  ;;  %182 = sbr.rel (%p266_p8) target bundleno = 71 (0x47), region = 36 }
  0x39   : > { %v174_v11 = vsel %vm171_vm0, %v163_v9, 0.0 }
  0x3a   : > { %v177_v12 = vadd.f32 %v175_v10, %v174_v11 }
  0x3c   : > { %178 = vst [vmem:[#allocation2] sm:$0xff] %v177_v12 }
  0x43   : > { %v183_v13 = vld [vmem:[#allocation2] sm:$0xff] }
  0x44   : > { %v184_v14 = vmul.f32 0.0006510417, %v183_v13 }
  0x46   : > { %185 = vst [vmem:[#allocation6] sm:$0xff] %v184_v14 }
  0x47 PF: > { %p535_p11 = scmp.eq.s32.totalorder %s256_s12, 1  ;;  %s445_s18 = smov [#allocation6]  }
  0x48   : > { %s195_s19 = sshll.u32 %s445_s18, 4  ;;  %s196_s19 = int_to_ptr.vmem [resolvable:$true] %s195_s19 }
  0x49   : > { %s363_s20 = scalar_lea.vmem %s196_s19, 128  ;;  %p370_p1 = scmp.lt.s32.totalorder %s196_s19, %s196_s19 }
  0x4a   : > { %p364_p12 = scmp.ne.s32.totalorder %s196_s19, %s363_s20  ;;  %p371_p2 = scmp.lt.s32.totalorder %s363_s20, %s363_s20 }
  0x4c   : > { %p365_p13 = pnand %p364_p12, %p535_p11  ;;  %p372_p3 = por %p371_p2, %p370_p1 }
  0x4e   : > { %p366_p0 = pneg %p365_p13 }
  0x50   : > { %p373_p4 = pnand %p372_p3, %p366_p0 }
  0x52   : > { %376 = shalt.err (!%p373_p4)
}
  0x53   : > { %275 = dma.vmem_to_hbm [thread:$0]  (%p535_p11), %s196_s19, 128, %s569_s1, [#allocation5]  }
  0x54   : > { %416 = dma.done.wait (%p535_p11), [#allocation5], 128  }
  0x55   : > { %418 = vsyncadd (%p535_p11), [#allocation5], 4294967168 }
  0x56 PF: > { %s15_s11 = sadd.s32 1, %s441_s11   ;;  %s573_s6 = smov %s425_s7 }
  0x57   : > { %p12_p5 = scmp.ge.s32.totalorder %s15_s11, 4   ;;  %s574_s7 = smov %s429_s8 }
  0x58   : > { %s575_s8 = smov %s506_s21  ;;  %s576_s9 = smov %s437_s10 }
  0x59   : > { %s577_s10 = smov %s579_s13  ;;  %14 = sbr.rel (!%p12_p5) target bundleno = 5 (0x5), region = 70 }
  0x5e   :  { %208 = vsyncpa [#allocation4], 1 }
  0x5f   :  { %210 = vsyncpa [#allocation4 + $0x1], 1 }
  0x60   :  { %211 = vsyncpa [#allocation5], 1 }
  0x61   :  { %213 = vsyncpa [#allocation5 + $0x1], 1 }

</bundles_post_ra>
